<compile_context>
chip_gen: v7x
topology: tpu7x:2x2x1
jax: 0.10.0
libtpu: 0.0.40
codegen_flags: <defaults>
</compile_context>

<pallas_src>
import functools

import jax
import jax.numpy as jnp
from jax.experimental import pallas as pl
from jax.experimental.pallas import tpu as pltpu


def _logistic_loss_kernel(pos_ref, n1_ref, n2_ref, out_ref, *, batch, block_rows):
    i = pl.program_id(0)

    # Row-validity mask for the (possibly ragged) last batch block.
    row_ids = jax.lax.broadcasted_iota(jnp.int32, (block_rows, 1), 0) + i * block_rows
    valid = row_ids < batch                                    # (block_rows, 1)

    def _softplus_sum(ref, flip_col0):
        x = ref[...].astype(jnp.float32)                       # in-kernel cast (VPU)
        if flip_col0:
            # Global column 0 has truth = +1  => z = -score; all others -1 => z = +score.
            col = jax.lax.broadcasted_iota(jnp.int32, x.shape, 1)
            z = jnp.where(col == 0, -x, x)
        else:
            z = x
        sp = jnp.log(1.0 + jnp.exp(z))                         # faithful to torch.log(1+exp(.))
        sp = jnp.where(valid, sp, 0.0)                         # zero out padded rows
        return jnp.sum(sp)

    partial = (_softplus_sum(pos_ref, True)
               + _softplus_sum(n1_ref, False)
               + _softplus_sum(n2_ref, False))

    # Lane-dense (1, 128) output row; the partial sum lives in lane 0.
    lane = jax.lax.broadcasted_iota(jnp.int32, (1, 128), 1)
    out_ref[...] = jnp.where(lane == 0, partial, 0.0)


def _pick_block_rows(batch, row_bytes, max_rows=1024):
    """Rows per batch block: ~4 MiB per step, multiple of 8, capped at max_rows/batch."""
    if batch <= 8:
        return batch
    target_bytes = 4 << 20
    rows = max(8, min(max_rows, target_bytes // max(row_bytes, 1)))
    rows -= rows % 8
    return int(min(rows, batch))


def logistic_loss(positive, negative_1, negative_2):
    B = positive.shape[0]
    c_p, c_n1, c_n2 = positive.shape[1], negative_1.shape[1], negative_2.shape[1]
    C = c_p + c_n1 + c_n2

    row_bytes = (c_p * positive.dtype.itemsize
                 + c_n1 * negative_1.dtype.itemsize
                 + c_n2 * negative_2.dtype.itemsize)
    block_rows = _pick_block_rows(B, row_bytes)
    grid = pl.cdiv(B, block_rows)

    kernel = functools.partial(_logistic_loss_kernel, batch=B, block_rows=block_rows)

    partials = pl.pallas_call(
        kernel,
        out_shape=jax.ShapeDtypeStruct((grid, 128), jnp.float32),
        grid=(grid,),
        in_specs=[
            pl.BlockSpec((block_rows, c_p), lambda i: (i, 0)),
            pl.BlockSpec((block_rows, c_n1), lambda i: (i, 0)),
            pl.BlockSpec((block_rows, c_n2), lambda i: (i, 0)),
        ],
        out_specs=pl.BlockSpec((1, 128), lambda i: (i, 0)),
        compiler_params=pltpu.CompilerParams(
            dimension_semantics=("parallel",)),
    )(positive, negative_1, negative_2)

    # 1/(B*C) is a trace-time constant -> multiply instead of divide.
    return jnp.sum(partials) * jnp.float32(1.0 / (C * B))


def _reference(positive, negative_1, negative_2):
    scores = jnp.concatenate([positive, negative_1, negative_2], axis=-1).astype(jnp.float32)
    B, C = scores.shape
    truth = jnp.full((1, C), -1.0, dtype=jnp.float32).at[0, 0].set(1.0)
    x = jnp.log(1.0 + jnp.exp(-scores * truth))
    return x.sum() / (C * B)


if __name__ == "__main__":
    key = jax.random.PRNGKey(0)
    k1, k2, k3 = jax.random.split(key, 3)
    # Small shapes consistent with the forward: (batch, num_scores) 2-D inputs.
    positive = jax.random.normal(k1, (2, 1), dtype=jnp.float32)
    negative_1 = jax.random.normal(k2, (2, 8), dtype=jnp.float32)
    negative_2 = jax.random.normal(k3, (2, 7), dtype=jnp.float32)

    loss = jax.block_until_ready(logistic_loss(positive, negative_1, negative_2))
    ref = jax.block_until_ready(_reference(positive, negative_1, negative_2))
    assert jnp.allclose(loss, ref, rtol=1e-5, atol=1e-5), (loss, ref)
    print("KERNEL_OK")
</pallas_src>

<mosaic_0001>
module attributes {stable_mosaic.version = 11 : i64} {
  func.func @_logistic_loss_kernel(%arg0: i32, %arg1: memref<2x1xf32, #tpu.memory_space<vmem>>, %arg2: memref<2x8xf32, #tpu.memory_space<vmem>>, %arg3: memref<2x7xf32, #tpu.memory_space<vmem>>, %arg4: memref<1x128xf32, #tpu.memory_space<vmem>>) attributes {dimension_semantics = [#tpu.dimension_semantics<parallel>], iteration_bounds = array<i64: 1>, scalar_prefetch = 0 : i64, scratch_operands = 0 : i64, tpu.core_type = #tpu.core_type<tc>, window_params = [{transform_indices = @transform_0, window_bounds = array<i64: 2, 1>}, {transform_indices = @transform_1, window_bounds = array<i64: 2, 8>}, {transform_indices = @transform_2, window_bounds = array<i64: 2, 7>}, {transform_indices = @transform_3, window_bounds = array<i64: 1, 128>}]} {
    %0 = tpu.iota {dimensions = array<i32: 0>} : vector<2x1xi32>
    %c2_i32 = arith.constant 2 : i32
    %1 = arith.muli %arg0, %c2_i32 : i32
    %2 = vector.broadcast %1 : i32 to vector<2x1xi32>
    %3 = arith.addi %0, %2 : vector<2x1xi32>
    %c2_i32_0 = arith.constant 2 : i32
    %4 = vector.broadcast %c2_i32_0 : i32 to vector<2x1xi32>
    %5 = arith.cmpi slt, %3, %4 : vector<2x1xi32>
    %c0 = arith.constant 0 : index
    %c0_1 = arith.constant 0 : index
    %6 = vector.load %arg1[%c0, %c0_1] : memref<2x1xf32, #tpu.memory_space<vmem>>, vector<2x1xf32>
    %7 = tpu.iota {dimensions = array<i32: 1>} : vector<2x1xi32>
    %c0_i32 = arith.constant 0 : i32
    %8 = vector.broadcast %c0_i32 : i32 to vector<2x1xi32>
    %9 = arith.cmpi eq, %7, %8 : vector<2x1xi32>
    %cst = arith.constant 0.000000e+00 : f32
    %10 = vector.broadcast %cst : f32 to vector<2x1xf32>
    %11 = arith.subf %10, %6 : vector<2x1xf32>
    %12 = arith.select %9, %11, %6 : vector<2x1xi1>, vector<2x1xf32>
    %13 = math.exp %12 : vector<2x1xf32>
    %cst_2 = arith.constant 1.000000e+00 : f32
    %14 = vector.broadcast %cst_2 : f32 to vector<2x1xf32>
    %15 = arith.addf %14, %13 : vector<2x1xf32>
    %16 = math.log %15 : vector<2x1xf32>
    %cst_3 = arith.constant 0.000000e+00 : f32
    %17 = vector.broadcast %cst_3 : f32 to vector<2x1xf32>
    %18 = arith.select %5, %16, %17 : vector<2x1xi1>, vector<2x1xf32>
    %19 = vector.shape_cast %18 : vector<2x1xf32> to vector<1x2x1xf32>
    %cst_4 = arith.constant dense<0.000000e+00> : vector<1xf32>
    %20 = vector.multi_reduction <add>, %19, %cst_4 [1, 2] : vector<1x2x1xf32> to vector<1xf32>
    %21 = vector.shape_cast %20 : vector<1xf32> to vector<1x1x1xf32>
    %22 = vector.extract %21[0, 0, 0] : f32 from vector<1x1x1xf32>
    %c0_5 = arith.constant 0 : index
    %c0_6 = arith.constant 0 : index
    %23 = vector.load %arg2[%c0_5, %c0_6] : memref<2x8xf32, #tpu.memory_space<vmem>>, vector<2x8xf32>
    %24 = math.exp %23 : vector<2x8xf32>
    %cst_7 = arith.constant 1.000000e+00 : f32
    %25 = vector.broadcast %cst_7 : f32 to vector<2x8xf32>
    %26 = arith.addf %25, %24 : vector<2x8xf32>
    %27 = math.log %26 : vector<2x8xf32>
    %cst_8 = arith.constant 0.000000e+00 : f32
    %28 = vector.shape_cast %5 : vector<2x1xi1> to vector<2x1xi1>
    %29 = vector.broadcast %28 : vector<2x1xi1> to vector<2x8xi1>
    %30 = vector.broadcast %cst_8 : f32 to vector<2x8xf32>
    %31 = arith.select %29, %27, %30 : vector<2x8xi1>, vector<2x8xf32>
    %32 = vector.shape_cast %31 : vector<2x8xf32> to vector<1x2x8xf32>
    %cst_9 = arith.constant dense<0.000000e+00> : vector<1xf32>
    %33 = vector.multi_reduction <add>, %32, %cst_9 [1, 2] : vector<1x2x8xf32> to vector<1xf32>
    %34 = vector.shape_cast %33 : vector<1xf32> to vector<1x1x1xf32>
    %35 = vector.extract %34[0, 0, 0] : f32 from vector<1x1x1xf32>
    %36 = arith.addf %22, %35 : f32
    %c0_10 = arith.constant 0 : index
    %c0_11 = arith.constant 0 : index
    %37 = vector.load %arg3[%c0_10, %c0_11] : memref<2x7xf32, #tpu.memory_space<vmem>>, vector<2x7xf32>
    %38 = math.exp %37 : vector<2x7xf32>
    %cst_12 = arith.constant 1.000000e+00 : f32
    %39 = vector.broadcast %cst_12 : f32 to vector<2x7xf32>
    %40 = arith.addf %39, %38 : vector<2x7xf32>
    %41 = math.log %40 : vector<2x7xf32>
    %cst_13 = arith.constant 0.000000e+00 : f32
    %42 = vector.shape_cast %5 : vector<2x1xi1> to vector<2x1xi1>
    %43 = vector.broadcast %42 : vector<2x1xi1> to vector<2x7xi1>
    %44 = vector.broadcast %cst_13 : f32 to vector<2x7xf32>
    %45 = arith.select %43, %41, %44 : vector<2x7xi1>, vector<2x7xf32>
    %46 = vector.shape_cast %45 : vector<2x7xf32> to vector<1x2x7xf32>
    %cst_14 = arith.constant dense<0.000000e+00> : vector<1xf32>
    %47 = vector.multi_reduction <add>, %46, %cst_14 [1, 2] : vector<1x2x7xf32> to vector<1xf32>
    %48 = vector.shape_cast %47 : vector<1xf32> to vector<1x1x1xf32>
    %49 = vector.extract %48[0, 0, 0] : f32 from vector<1x1x1xf32>
    %50 = arith.addf %36, %49 : f32
    %51 = tpu.iota {dimensions = array<i32: 1>} : vector<1x128xi32>
    %c0_i32_15 = arith.constant 0 : i32
    %52 = vector.broadcast %c0_i32_15 : i32 to vector<1x128xi32>
    %53 = arith.cmpi eq, %51, %52 : vector<1x128xi32>
    %cst_16 = arith.constant 0.000000e+00 : f32
    %54 = vector.broadcast %50 : f32 to vector<1x128xf32>
    %55 = vector.broadcast %cst_16 : f32 to vector<1x128xf32>
    %56 = arith.select %53, %54, %55 : vector<1x128xi1>, vector<1x128xf32>
    %c0_17 = arith.constant 0 : index
    %c0_18 = arith.constant 0 : index
    %57 = vector.load %arg4[%c0_17, %c0_18] : memref<1x128xf32, #tpu.memory_space<vmem>>, vector<1x128xf32>
    tpu.vector_store %arg4[%c0_17, %c0_18], %56 {strides = array<i32>} : memref<1x128xf32, #tpu.memory_space<vmem>>, vector<1x128xf32>,
    return
  }
  func.func @transform_0(%arg0: i32) -> (i32, i32) {
    %c0_i32 = arith.constant 0 : i32
    %c0_i32_0 = arith.constant 0 : i32
    return %arg0, %c0_i32 : i32, i32
  }
  func.func @transform_1(%arg0: i32) -> (i32, i32) {
    %c0_i32 = arith.constant 0 : i32
    %c0_i32_0 = arith.constant 0 : i32
    return %arg0, %c0_i32 : i32, i32
  }
  func.func @transform_2(%arg0: i32) -> (i32, i32) {
    %c0_i32 = arith.constant 0 : i32
    %c0_i32_0 = arith.constant 0 : i32
    return %arg0, %c0_i32 : i32, i32
  }
  func.func @transform_3(%arg0: i32) -> (i32, i32) {
    %c0_i32 = arith.constant 0 : i32
    %c0_i32_0 = arith.constant 0 : i32
    return %arg0, %c0_i32 : i32, i32
  }
}

</mosaic_0001>

<bundles_post_ra>
// kernel: tpu_custom_call.1
= control target key start
LH: loop header
LB: loop body
LE: loop exit
PB: predicated region body
PF: predicated region fallthrough
CT: control target
= control target key end

     0   :  { %v15_v0 = vlaneseq  ;;  %s193_s0 = inlined_call_operand.vmem [shape: f32[2,1], index: 0, kind: input, shape index: {}]   ;;  %s194_s1 = inlined_call_operand.vmem [shape: f32[2,8], index: 1, kind: input, shape index: {}]   ;;  %s195_s2 = inlined_call_operand.vmem [shape: f32[2,7], index: 2, kind: input, shape index: {}]   ;;  %s196_s3 = inlined_call_operand.hbm [shape: f32[1,128], index: 3, kind: output, shape index: {}]  }
   0x1   :  { %v65_v1 = vld [vmem:[%s195_s2] sm:$0x3] }
   0x2   :  { %v21_v2 = vld [vmem:[%s193_s0] sm:$0x3]  ;;  %v66_v3 = vmul.f32 1.442695, %v65_v1  ;;  %v174_v6 = vand.u32 127, %v15_v0 }
   0x3   :  { %v25_v4 = vsub.f32 0.0, %v21_v2  ;;  %v44_v5 = vld [vmem:[%s194_s1] sm:$0x3] }
   0x4   :  { %v45_v7 = vmul.f32 1.442695, %v44_v5 }
   0x5   :  { %8 = vsyncpa [#allocation3], 0  ;;  %108 = vpow2.f32 %v66_v3  ;;  %vm24_vm0 = vcmp.eq.s32.totalorder %v174_v6, 0  ;;  %v16_v16 = vshrl.u32 %v15_v0, 7  ;;  %vm72_vm2 = vcmask 50176   ;;  %s144_s19 = smov [#allocation2]  }
   0x6   :  { %110 = vpow2.f32 %v45_v7  ;;  %v26_v8 = vsel %vm24_vm0, %v25_v4, %v21_v2  ;;  %vm33_vm3 = vcmask 1024   ;;  %vm53_vm4 = vcmask 58368   ;;  %s93_s20 = sshll.u32 %s144_s19, 4  ;;  %s94_s20 = int_to_ptr.vmem [resolvable:$true] %s93_s20 }
   0x7   :  { %v27_v9 = vmul.f32 1.442695, %v26_v8  ;;  %vm20_vm1 = vcmp.lt.s32.totalorder %v16_v16, 2  ;;  %s120_s22 = scalar_lea.vmem %s94_s20, 16  ;;  %s124_s23 = scalar_lea.vmem %s94_s20, 32 }
   0x8   :  { %p121_p0 = scmp.ne.s32.totalorder %s94_s20, %s120_s22  ;;  %p125_p1 = scmp.lt.s32.totalorder %s94_s20, %s94_s20 }
   0x9   :  { %112 = vpow2.f32 %v27_v9  ;;  %p126_p2 = scmp.lt.s32.totalorder %s124_s23, %s120_s22 }
   0xb   :  { %p127_p3 = por %p126_p2, %p125_p1 }
   0xd   :  { %p128_p4 = pnand %p127_p3, %p121_p0 }
   0xf   :  { %v109_v10 = vpop.eup %108 }
  0x10   :  { %v111_v11 = vpop.eup %110  ;;  %v68_v12 = vadd.f32 1.0, %v109_v10 }
  0x11   :  { %v47_v13 = vadd.f32 1.0, %v111_v11 }
  0x12   :  { %114 = vlog2.f32 %v68_v12 }
  0x13   :  { %116 = vlog2.f32 %v47_v13  ;;  %v113_v14 = vpop.eup %112 }
  0x14   :  { %v29_v15 = vadd.f32 1.0, %v113_v14 }
  0x16   :  { %118 = vlog2.f32 %v29_v15 }
  0x1c   :  { %v115_v17 = vpop.eup %114 }
  0x1d   :  { %v117_v18 = vpop.eup %116  ;;  %v70_v19 = vmul.f32 0.6931472, %v115_v17 }
  0x1e   :  { %v49_v22 = vmul.f32 0.6931472, %v117_v18 }
  0x1f   :  { %v71_v20 = vsel %vm20_vm1, %v70_v19, 0.0 }
  0x20   :  { %v73_v21 = vsel %vm72_vm2, %v71_v20, 0.0  ;;  %v119_v23 = vpop.eup %118  ;;  %v52_v26 = vsel %vm20_vm1, %v49_v22, 0.0 }
  0x21   :  { %74 = vadd.xlane.f32.xlu1 %v73_v21  ;;  %v31_v24 = vmul.f32 0.6931472, %v119_v23  ;;  %v54_v28 = vsel %vm53_vm4, %v52_v26, 0.0 }
  0x23   :  { %v32_v25 = vsel %vm20_vm1, %v31_v24, 0.0 }
  0x24   :  { %v34_v27 = vsel %vm33_vm3, %v32_v25, 0.0 }
  0x25   :  { %35 = vadd.xlane.f32.xlu0 %v34_v27 }
  0x29   :  { %55 = vadd.xlane.f32.xlu0 %v54_v28 }
  0xae   :  { %v75_v29 = vpop.xlane.xlu1 %74 }
  0xaf   :  { %v76_v30 = vrot.slane %v75_v29, 4 }
  0xb1   :  { %v77_v31 = vadd.f32 %v76_v30, %v75_v29 }
  0xb2   :  { %v36_v32 = vpop.xlane.xlu0 %35 }
  0xb3   :  { %v37_v33 = vrot.slane %v36_v32, 4  ;;  %v78_v35 = vrot.slane %v77_v31, 2 }
  0xb5   :  { %v38_v34 = vadd.f32 %v37_v33, %v36_v32  ;;  %v79_v41 = vadd.f32 %v78_v35, %v77_v31 }
  0xb6   :  { %v56_v36 = vpop.xlane.xlu0 %55 }
  0xb7   :  { %v39_v37 = vrot.slane %v38_v34, 2  ;;  %v57_v38 = vrot.slane %v56_v36, 4  ;;  %v80_v46 = vrot.slane %v79_v41, 1 }
  0xb9   :  { %v58_v39 = vadd.f32 %v57_v38, %v56_v36  ;;  %v40_v40 = vadd.f32 %v39_v37, %v38_v34  ;;  %v81_v49 = vadd.f32 %v80_v46, %v79_v41 }
  0xbb   :  { %v59_v42 = vrot.slane %v58_v39, 2  ;;  %v41_v43 = vrot.slane %v40_v40, 1 }
  0xbd   :  { %v60_v44 = vadd.f32 %v59_v42, %v58_v39  ;;  %v42_v45 = vadd.f32 %v41_v43, %v40_v40 }
  0xbf   :  { %101 = vpush %v42_v45  ;;  %v61_v47 = vrot.slane %v60_v44, 1 }
  0xc1   :  { %v62_v48 = vadd.f32 %v61_v47, %v60_v44 }
  0xc3   :  { %103 = vpush %v62_v48 }
  0xc4   :  { %105 = vpush %v81_v49 }
  0xf0   :  { %s102_s0 = spop %101 }
  0xf4   :  { %s104_s1 = spop %103 }
  0xf5   :  { %s64_s2 = sadd.f32 %s104_s1, %s102_s0  ;;  %s106_s18 = spop %105 }
  0xf7   :  { %s83_s21 = sadd.f32 %s106_s18, %s64_s2 }
  0xf9   :  { %v84_v50 = vstv %s83_s21 }
  0xfa   :  { %v85_v51 = vsel %vm24_vm0, %v84_v50, 0.0 }
  0xfb   :  { %86 = vst [vmem:[#allocation2] sm:$0x1] %v85_v51 }
  0xfc   :  { %131 = shalt.err (!%p128_p4)
}
  0xfd   :  { %s132_s26 = scalar_lea.hbm %s196_s3, 16 }
  0xfe   :  { %p133_p5 = scmp.ne.s32.totalorder %s196_s3, %s132_s26  ;;  %p136_p6 = scmp.lt.u32.totalorder %s132_s26, %s196_s3 }
 0x100   :  { %p138_p7 = pnand %p136_p6, %p133_p5 }
 0x102   :  { %141 = shalt.err (!%p138_p7)
}
 0x103   :  { %96 = dma.vmem_to_hbm [thread:$0]  %s94_s20, 16, %s196_s3, [#allocation3]  }
 0x104   :  { %142 = dma.done.wait [#allocation3], 16  }
 0x105   :  { %143 = vsyncadd [#allocation3], 4294967280 }
 0x106   :  { %100 = vsyncpa [#allocation3], 1 }

</bundles_post_ra>
